<compile_context>
chip_gen: v5e
topology: v5e:2x2
jax: 0.10.0
libtpu: 0.0.40
codegen_flags: <defaults>
</compile_context>

<pallas_src>
import functools

import jax
import jax.numpy as jnp
from jax.experimental import pallas as pl
from jax.experimental.pallas import tpu as pltpu

LANE = 128      # vreg lane width (last dim)
SUBLANE = 8     # f32 sublane height (second-to-last dim)

# bf16 feeds + f32 accumulation by default (v6e/v7x MXU throughput; safe on v5e).
# Use jnp.float32 for bit-exact f32, or jnp.float8_e4m3fn for v7x inference.
DEFAULT_MXU_DTYPE = jnp.bfloat16


def _round_up(n, m):
    return ((n + m - 1) // m) * m


def _cdiv(a, b):
    return (a + b - 1) // b


def _vmem_capacity_bytes():
    """Physical VMEM of the local chip (conservative 64 MiB fallback = v7x)."""
    try:
        info = pltpu.get_tpu_info()
        cap = getattr(info, "vmem_capacity_bytes", None)
        if cap:
            return int(cap)
    except Exception:
        pass
    return 64 << 20


# --------------------------------------------------------------------------
# Kernels
# --------------------------------------------------------------------------
def _mlp_kernel_resident(num_hidden, mxu_dtype, has_hidden, *refs):
    """All weights resident in VMEM; hidden layers statically unrolled.

    refs (has_hidden=True):  x, w_in, b_in, w_hid, b_hid, w_out, b_out, o
    refs (has_hidden=False): x, w_in, b_in, w_out, b_out, o
    Weights arrive already in mxu_dtype; only the activation is cast.
    """
    if has_hidden:
        x_ref, w_in_ref, b_in_ref, w_hid_ref, b_hid_ref, w_out_ref, b_out_ref, o_ref = refs
    else:
        x_ref, w_in_ref, b_in_ref, w_out_ref, b_out_ref, o_ref = refs

    def mm(a, w):
        return jnp.dot(a.astype(mxu_dtype), w, preferred_element_type=jnp.float32)

    x = x_ref[...]
    # input layer + ReLU (bias add / ReLU on full 128-lane vregs thanks to padding)
    h = jnp.maximum(mm(x, w_in_ref[...]) + b_in_ref[...], 0.0)

    if has_hidden:
        # residual hidden layers (static unroll; large L/H uses the streaming path)
        for i in range(num_hidden):
            z = mm(h, w_hid_ref[i]) + b_hid_ref[i]
            h = jnp.maximum(z, 0.0) + h

    # output layer (no activation); padded d_out -> unmasked lane-dense store
    o_ref[...] = (mm(h, w_out_ref[...]) + b_out_ref[...]).astype(o_ref.dtype)


def _mlp_kernel_stream(num_hidden, mxu_dtype,
                       x_ref, w_in_ref, b_in_ref, w_hid_ref, b_hid_ref,
                       w_out_ref, b_out_ref, o_ref, h_ref):
    """Layer-streaming path: grid axis 1 walks hidden layers ('arbitrary').

    Only one (1, H_p, H_p) weight slab is resident per step (double-buffered
    by the pipeline so the next layer's DMA overlaps this layer's matmul).
    The activation h lives in a VMEM scratch accumulator across layer steps.
    """
    l = pl.program_id(1)

    def mm(a, w):
        return jnp.dot(a.astype(mxu_dtype), w, preferred_element_type=jnp.float32)

    @pl.when(l == 0)
    def _():
        h_ref[...] = jnp.maximum(mm(x_ref[...], w_in_ref[...]) + b_in_ref[...], 0.0)

    h = h_ref[...]
    z = mm(h, w_hid_ref[0]) + b_hid_ref[0]
    h_new = jnp.maximum(z, 0.0) + h
    h_ref[...] = h_new

    @pl.when(l == num_hidden - 1)
    def _():
        o_ref[...] = (mm(h_new, w_out_ref[...]) + b_out_ref[...]).astype(o_ref.dtype)


# --------------------------------------------------------------------------
# Parameter preparation (one-time padding + MXU-dtype cast)
# --------------------------------------------------------------------------
def prepare_params(params, mxu_dtype=DEFAULT_MXU_DTYPE):
    """Pad feature dims to lane multiples and pre-cast weights to mxu_dtype.

    Call once per parameter set (not per forward call): the O(L*H^2) padding /
    cast is pure data movement and should not sit in the per-step path.
    Zero padding preserves the math exactly (see numerics note at top).
    """
    w_in, b_in = params["w_in"], params["b_in"]
    w_hid, b_hid = params["w_hid"], params["b_hid"]
    w_out, b_out = params["w_out"], params["b_out"]

    d_in, H = int(w_in.shape[0]), int(w_in.shape[1])
    d_out = int(w_out.shape[1])
    L = int(w_hid.shape[0])

    d_in_p = _round_up(d_in, LANE)
    H_p = _round_up(H, LANE)
    d_out_p = _round_up(d_out, LANE)

    f32 = jnp.float32
    wd = jnp.dtype(mxu_dtype)

    prepared = {
        "w_in_p": jnp.zeros((d_in_p, H_p), wd).at[:d_in, :H].set(w_in.astype(wd)),
        "b_in_p": jnp.zeros((1, H_p), f32).at[:, :H].set(b_in.astype(f32)),
        "w_out_p": jnp.zeros((H_p, d_out_p), wd).at[:H, :d_out].set(w_out.astype(wd)),
        "b_out_p": jnp.zeros((1, d_out_p), f32).at[:, :d_out].set(b_out.astype(f32)),
        "d_in": d_in, "H": H, "d_out": d_out, "L": L,
        "d_in_p": d_in_p, "H_p": H_p, "d_out_p": d_out_p,
        "mxu_dtype": wd,
    }
    if L > 0:
        prepared["w_hid_p"] = (
            jnp.zeros((L, H_p, H_p), wd).at[:, :H, :H].set(w_hid.astype(wd)))
        prepared["b_hid_p"] = (
            jnp.zeros((L, 1, H_p), f32).at[:, :, :H].set(b_hid.astype(f32)))
    return prepared


# --------------------------------------------------------------------------
# Forward pass
# --------------------------------------------------------------------------
def meta_model_forward(x, params, *, max_batch_tile=256, force_stream=False,
                       mxu_dtype=None):
    """MetaModelGenerator forward pass as a single fused Pallas kernel.

    x:      (B, input_size) float32
    params: output of `prepare_params` (raw param dicts are accepted and
            prepared on the fly as a convenience, but that re-pads per call).
    """
    if "w_in_p" not in params:
        params = prepare_params(params, mxu_dtype or DEFAULT_MXU_DTYPE)
    p = params

    d_in, H, d_out, L = p["d_in"], p["H"], p["d_out"], p["L"]
    d_in_p, H_p, d_out_p = p["d_in_p"], p["H_p"], p["d_out_p"]
    wd = p["mxu_dtype"]
    witem = jnp.dtype(wd).itemsize

    B = x.shape[0]
    assert x.shape[1] == d_in, "input feature dim mismatch"
    f32 = jnp.float32

    # ---- balanced batch tiling --------------------------------------------
    n_tiles = max(1, _cdiv(B, max_batch_tile))
    tb = _round_up(_cdiv(B, n_tiles), SUBLANE)
    # Prefer a lane-multiple tile height only when it adds no extra padding rows.
    tb_lane = _round_up(tb, LANE)
    if tb >= LANE and _round_up(B, tb_lane) <= _round_up(B, tb):
        tb = tb_lane
    B_p = _round_up(B, tb)
    grid_b = B_p // tb
    # Give v7x's second TensorCore work when a large batch fits one block
    # (no measurable cost on single-TC v5e/v6e: one extra ~0.35us grid step).
    if grid_b == 1 and tb >= 2 * LANE and tb % (2 * SUBLANE) == 0:
        tb //= 2
        grid_b = 2
        B_p = tb * grid_b

    xp = jnp.zeros((B_p, d_in_p), f32).at[:B, :d_in].set(x.astype(f32))

    # ---- path selection: resident weight stack vs. per-layer streaming -----
    vmem_cap = _vmem_capacity_bytes()
    resident_w_bytes = witem * (d_in_p * H_p + max(L, 1) * H_p * H_p + H_p * d_out_p)
    use_stream = (L >= 1) and (force_stream or resident_w_bytes > vmem_cap // 2)

    total_steps = grid_b * (L if use_stream else 1)
    inv_w_bytes = witem * (d_in_p * H_p + H_p * d_out_p) + \
        (0 if use_stream else witem * max(L, 1) * H_p * H_p)
    # Single-buffer grid-invariant weights only when the grid revisits them and
    # the slab is big enough to matter.  (Correct only because their index_map
    # is constant; the streamed w_hid below keeps default double-buffering.)
    single_buffer = total_steps > 1 and inv_w_bytes > (2 << 20)

    if single_buffer:
        def inv_spec(shape, idx):
            return pl.BlockSpec(shape, idx, pipeline_mode=pl.Buffered(1))
    else:
        def inv_spec(shape, idx):
            return pl.BlockSpec(shape, idx)

    if not use_stream:
        has_hidden = L > 0
        if has_hidden:
            in_specs = [
                pl.BlockSpec((tb, d_in_p), lambda i: (i, 0)),        # x tile (streamed)
                inv_spec((d_in_p, H_p), lambda i: (0, 0)),           # w_in
                inv_spec((1, H_p), lambda i: (0, 0)),                # b_in
                inv_spec((L, H_p, H_p), lambda i: (0, 0, 0)),        # w_hid stack
                inv_spec((L, 1, H_p), lambda i: (0, 0, 0)),          # b_hid stack
                inv_spec((H_p, d_out_p), lambda i: (0, 0)),          # w_out
                inv_spec((1, d_out_p), lambda i: (0, 0)),            # b_out
            ]
            args = (xp, p["w_in_p"], p["b_in_p"], p["w_hid_p"], p["b_hid_p"],
                    p["w_out_p"], p["b_out_p"])
        else:
            in_specs = [
                pl.BlockSpec((tb, d_in_p), lambda i: (i, 0)),
                inv_spec((d_in_p, H_p), lambda i: (0, 0)),
                inv_spec((1, H_p), lambda i: (0, 0)),
                inv_spec((H_p, d_out_p), lambda i: (0, 0)),
                inv_spec((1, d_out_p), lambda i: (0, 0)),
            ]
            args = (xp, p["w_in_p"], p["b_in_p"], p["w_out_p"], p["b_out_p"])
        out_spec = pl.BlockSpec((tb, d_out_p), lambda i: (i, 0))
        grid = (grid_b,)
        dims = ("parallel",)
        scratch = []
        kernel = functools.partial(_mlp_kernel_resident, L, wd, has_hidden)

        wbuf = 1 if single_buffer else 2
        est = (wbuf * resident_w_bytes
               + wbuf * 4 * (H_p + max(L, 1) * H_p + d_out_p)        # biases (f32)
               + 2 * 4 * tb * (d_in_p + d_out_p)                     # x / out stream (2-deep)
               + (4 + 2 * witem) * 3 * tb * H_p)                     # activations + cast temps
    else:
        in_specs = [
            pl.BlockSpec((tb, d_in_p), lambda i, l: (i, 0)),          # x (re-fetched per batch tile)
            inv_spec((d_in_p, H_p), lambda i, l: (0, 0)),             # w_in
            inv_spec((1, H_p), lambda i, l: (0, 0)),                  # b_in
            pl.BlockSpec((1, H_p, H_p), lambda i, l: (l, 0, 0)),      # w_hid: streamed per layer
            pl.BlockSpec((1, 1, H_p), lambda i, l: (l, 0, 0)),        # b_hid: streamed per layer
            inv_spec((H_p, d_out_p), lambda i, l: (0, 0)),            # w_out
            inv_spec((1, d_out_p), lambda i, l: (0, 0)),              # b_out
        ]
        args = (xp, p["w_in_p"], p["b_in_p"], p["w_hid_p"], p["b_hid_p"],
                p["w_out_p"], p["b_out_p"])
        out_spec = pl.BlockSpec((tb, d_out_p), lambda i, l: (i, 0))   # resident across l
        grid = (grid_b, L)
        dims = ("parallel", "arbitrary")
        scratch = [pltpu.VMEM((tb, H_p), jnp.float32)]                # h accumulator
        kernel = functools.partial(_mlp_kernel_stream, L, wd)

        wbuf = 1 if single_buffer else 2
        est = (wbuf * witem * (d_in_p * H_p + H_p * d_out_p)          # resident in/out weights
               + 2 * (witem * H_p * H_p + 4 * H_p)                    # streamed layer slab (2-deep)
               + wbuf * 4 * (H_p + d_out_p)
               + 2 * 4 * tb * (d_in_p + d_out_p)
               + 4 * tb * H_p                                         # h scratch
               + (4 + 2 * witem) * 2 * tb * H_p)                      # temps + cast copies

    # ---- generation-aware scoped-VMEM limit ---------------------------------
    est = int(est) + (2 << 20)
    vmem_limit = None
    if est > (16 << 20):                       # smallest default scoped limit (v5e)
        vmem_limit = min(max(est, 32 << 20), vmem_cap - (8 << 20))

    y_pad = pl.pallas_call(
        kernel,
        out_shape=jax.ShapeDtypeStruct((B_p, d_out_p), f32),
        grid_spec=pltpu.PrefetchScalarGridSpec(
            num_scalar_prefetch=0,
            grid=grid,
            in_specs=in_specs,
            out_specs=out_spec,
            scratch_shapes=scratch,
        ),
        compiler_params=pltpu.CompilerParams(
            dimension_semantics=dims,
            vmem_limit_bytes=vmem_limit,
        ),
    )(*args)

    return y_pad[:B, :d_out].astype(x.dtype)


# --------------------------------------------------------------------------
# Init + pure-JAX reference (correctness)
# --------------------------------------------------------------------------
def init_params(key, input_size, hidden_sizes, output_size):
    """Deterministic init matching the module: N(0, 0.01) weights, zero bias.

    Residual connections require all hidden sizes to be equal (as the PyTorch
    forward implicitly assumes).
    """
    H = hidden_sizes[0]
    assert all(h == H for h in hidden_sizes), "residual path needs equal hidden sizes"
    L = len(hidden_sizes) - 1

    k_in, k_hid, k_out = jax.random.split(key, 3)
    # Weights stored as (in, out) == transpose of PyTorch's (out, in).
    w_in = 0.01 * jax.random.normal(k_in, (input_size, H), jnp.float32)
    w_hid = 0.01 * jax.random.normal(k_hid, (max(L, 1), H, H), jnp.float32)
    if L == 0:
        w_hid = w_hid[:0]
    w_out = 0.01 * jax.random.normal(k_out, (H, output_size), jnp.float32)

    return {
        "w_in": w_in,
        "b_in": jnp.zeros((1, H), jnp.float32),
        "w_hid": w_hid,
        "b_hid": jnp.zeros((max(L, 0), 1, H), jnp.float32),
        "w_out": w_out,
        "b_out": jnp.zeros((1, output_size), jnp.float32),
    }


def forward_ref(x, params):
    """Pure-JAX reference of the same forward pass."""
    h = jnp.maximum(x @ params["w_in"] + params["b_in"], 0.0)
    for i in range(params["w_hid"].shape[0]):
        h = jnp.maximum(h @ params["w_hid"][i] + params["b_hid"][i], 0.0) + h
    return h @ params["w_out"] + params["b_out"]


if __name__ == "__main__":
    # Small shapes consistent with the module's MLP forward.
    batch = 16
    input_size = 16
    hidden_sizes = [32, 32, 32]   # -> 2 residual hidden layers
    output_size = 8

    key = jax.random.PRNGKey(0)
    k_x, k_p = jax.random.split(key)
    x = jax.random.normal(k_x, (batch, input_size), jnp.float32)
    params = init_params(k_p, input_size, hidden_sizes, output_size)
    y_ref = forward_ref(x, params)

    # 1) exact-f32 MXU feeds, fused resident-weight path.
    prep_f32 = prepare_params(params, mxu_dtype=jnp.float32)
    y = jax.block_until_ready(meta_model_forward(x, prep_f32))
    assert y.shape == (batch, output_size)
    assert jnp.allclose(y, y_ref, atol=1e-5, rtol=1e-5), "f32 resident path mismatch"

    # 2) default bf16 MXU feeds (f32 accumulation) -> looser tolerance.
    prep_bf16 = prepare_params(params)   # DEFAULT_MXU_DTYPE = bf16
    y_bf = jax.block_until_ready(meta_model_forward(x, prep_bf16))
    assert jnp.allclose(y_bf, y_ref, atol=2e-2, rtol=2e-2), "bf16 resident path mismatch"

    # 3) layer-streaming path (per-layer weight DMA + VMEM h accumulator),
    #    forced so it is exercised even at tiny sizes.
    y_st = jax.block_until_ready(meta_model_forward(x, prep_f32, force_stream=True))
    assert jnp.allclose(y_st, y_ref, atol=1e-5, rtol=1e-5), "streaming path mismatch"

    # 4) no-hidden-layer model: hidden weight stack is skipped, not dummied.
    params0 = init_params(k_p, input_size, [32], output_size)
    y0 = jax.block_until_ready(
        meta_model_forward(x, prepare_params(params0, mxu_dtype=jnp.float32)))
    assert jnp.allclose(y0, forward_ref(x, params0), atol=1e-5, rtol=1e-5), \
        "no-hidden-layer path mismatch"

    # TODO(synk): meta_train_step / inner-loop MAML adaptation (autograd, SGD +
    # Nesterov, LR scheduling) and the plotting/metric helpers are training /
    # host-side procedures, not part of forward(); only forward is a kernel.
    print("KERNEL_OK")
</pallas_src>

<mosaic_0001>
module attributes {stable_mosaic.version = 11 : i64} {
  func.func @_mlp_kernel_resident(%arg0: i32, %arg1: memref<16x128xf32, #tpu.memory_space<vmem>>, %arg2: memref<128x128xf32, #tpu.memory_space<vmem>>, %arg3: memref<1x128xf32, #tpu.memory_space<vmem>>, %arg4: memref<2x128x128xf32, #tpu.memory_space<vmem>>, %arg5: memref<2x1x128xf32, #tpu.memory_space<vmem>>, %arg6: memref<128x128xf32, #tpu.memory_space<vmem>>, %arg7: memref<1x128xf32, #tpu.memory_space<vmem>>, %arg8: memref<16x128xf32, #tpu.memory_space<vmem>>) attributes {dimension_semantics = [#tpu.dimension_semantics<parallel>], iteration_bounds = array<i64: 1>, scalar_prefetch = 0 : i64, scratch_operands = 0 : i64, tpu.core_type = #tpu.core_type<tc>, window_params = [{transform_indices = @transform_0, window_bounds = array<i64: 16, 128>}, {pipeline_mode = #tpu.pipeline_mode<synchronous>, transform_indices = @transform_1, window_bounds = array<i64: 128, 128>}, {pipeline_mode = #tpu.pipeline_mode<synchronous>, transform_indices = @transform_2, window_bounds = array<i64: 1, 128>}, {pipeline_mode = #tpu.pipeline_mode<synchronous>, transform_indices = @transform_3, window_bounds = array<i64: 2, 128, 128>}, {pipeline_mode = #tpu.pipeline_mode<synchronous>, transform_indices = @transform_4, window_bounds = array<i64: 2, 1, 128>}, {pipeline_mode = #tpu.pipeline_mode<synchronous>, transform_indices = @transform_5, window_bounds = array<i64: 128, 128>}, {pipeline_mode = #tpu.pipeline_mode<synchronous>, transform_indices = @transform_6, window_bounds = array<i64: 1, 128>}, {transform_indices = @transform_7, window_bounds = array<i64: 16, 128>}]} {
    %c0 = arith.constant 0 : index
    %c0_0 = arith.constant 0 : index
    %0 = vector.load %arg1[%c0, %c0_0] : memref<16x128xf32, #tpu.memory_space<vmem>>, vector<16x128xf32>
    %c0_1 = arith.constant 0 : index
    %c0_2 = arith.constant 0 : index
    %1 = vector.load %arg2[%c0_1, %c0_2] : memref<128x128xf32, #tpu.memory_space<vmem>>, vector<128x128xf32>
    %cst = arith.constant dense<0.000000e+00> : vector<16x128xf32>
    %2 = tpu.matmul %0, %1, %cst {dimension_numbers = #tpu.dot_dimension_numbers<[1], [0], [0], [1], [0, 0, 1, 1], [], []>} : vector<16x128xf32>, vector<128x128xf32>, vector<16x128xf32> -> vector<16x128xf32>
    %c0_3 = arith.constant 0 : index
    %c0_4 = arith.constant 0 : index
    %3 = vector.load %arg3[%c0_3, %c0_4] : memref<1x128xf32, #tpu.memory_space<vmem>>, vector<1x128xf32>
    %4 = vector.broadcast %3 : vector<1x128xf32> to vector<16x128xf32>
    %5 = arith.addf %2, %4 : vector<16x128xf32>
    %cst_5 = arith.constant 0.000000e+00 : f32
    %6 = vector.broadcast %cst_5 : f32 to vector<16x128xf32>
    %7 = arith.maximumf %5, %6 : vector<16x128xf32>
    %c0_6 = arith.constant 0 : index
    %c0_7 = arith.constant 0 : index
    %c0_8 = arith.constant 0 : index
    %8 = vector.load %arg4[%c0_6, %c0_7, %c0_8] : memref<2x128x128xf32, #tpu.memory_space<vmem>>, vector<1x128x128xf32>
    %9 = vector.shape_cast %8 : vector<1x128x128xf32> to vector<128x128xf32>
    %cst_9 = arith.constant dense<0.000000e+00> : vector<16x128xf32>
    %10 = tpu.matmul %7, %9, %cst_9 {dimension_numbers = #tpu.dot_dimension_numbers<[1], [0], [0], [1], [0, 0, 1, 1], [], []>} : vector<16x128xf32>, vector<128x128xf32>, vector<16x128xf32> -> vector<16x128xf32>
    %c0_10 = arith.constant 0 : index
    %c0_11 = arith.constant 0 : index
    %c0_12 = arith.constant 0 : index
    %11 = vector.load %arg5[%c0_10, %c0_11, %c0_12] : memref<2x1x128xf32, #tpu.memory_space<vmem>>, vector<1x1x128xf32>
    %12 = vector.shape_cast %11 : vector<1x1x128xf32> to vector<1x128xf32>
    %13 = vector.broadcast %12 : vector<1x128xf32> to vector<16x128xf32>
    %14 = arith.addf %10, %13 : vector<16x128xf32>
    %cst_13 = arith.constant 0.000000e+00 : f32
    %15 = vector.broadcast %cst_13 : f32 to vector<16x128xf32>
    %16 = arith.maximumf %14, %15 : vector<16x128xf32>
    %17 = arith.addf %16, %7 : vector<16x128xf32>
    %c1 = arith.constant 1 : index
    %c0_14 = arith.constant 0 : index
    %c0_15 = arith.constant 0 : index
    %18 = vector.load %arg4[%c1, %c0_14, %c0_15] : memref<2x128x128xf32, #tpu.memory_space<vmem>>, vector<1x128x128xf32>
    %19 = vector.shape_cast %18 : vector<1x128x128xf32> to vector<128x128xf32>
    %cst_16 = arith.constant dense<0.000000e+00> : vector<16x128xf32>
    %20 = tpu.matmul %17, %19, %cst_16 {dimension_numbers = #tpu.dot_dimension_numbers<[1], [0], [0], [1], [0, 0, 1, 1], [], []>} : vector<16x128xf32>, vector<128x128xf32>, vector<16x128xf32> -> vector<16x128xf32>
    %c1_17 = arith.constant 1 : index
    %c0_18 = arith.constant 0 : index
    %c0_19 = arith.constant 0 : index
    %21 = vector.load %arg5[%c1_17, %c0_18, %c0_19] : memref<2x1x128xf32, #tpu.memory_space<vmem>>, vector<1x1x128xf32>
    %22 = vector.shape_cast %21 : vector<1x1x128xf32> to vector<1x128xf32>
    %23 = vector.broadcast %22 : vector<1x128xf32> to vector<16x128xf32>
    %24 = arith.addf %20, %23 : vector<16x128xf32>
    %cst_20 = arith.constant 0.000000e+00 : f32
    %25 = vector.broadcast %cst_20 : f32 to vector<16x128xf32>
    %26 = arith.maximumf %24, %25 : vector<16x128xf32>
    %27 = arith.addf %26, %17 : vector<16x128xf32>
    %c0_21 = arith.constant 0 : index
    %c0_22 = arith.constant 0 : index
    %28 = vector.load %arg6[%c0_21, %c0_22] : memref<128x128xf32, #tpu.memory_space<vmem>>, vector<128x128xf32>
    %cst_23 = arith.constant dense<0.000000e+00> : vector<16x128xf32>
    %29 = tpu.matmul %27, %28, %cst_23 {dimension_numbers = #tpu.dot_dimension_numbers<[1], [0], [0], [1], [0, 0, 1, 1], [], []>} : vector<16x128xf32>, vector<128x128xf32>, vector<16x128xf32> -> vector<16x128xf32>
    %c0_24 = arith.constant 0 : index
    %c0_25 = arith.constant 0 : index
    %30 = vector.load %arg7[%c0_24, %c0_25] : memref<1x128xf32, #tpu.memory_space<vmem>>, vector<1x128xf32>
    %31 = vector.broadcast %30 : vector<1x128xf32> to vector<16x128xf32>
    %32 = arith.addf %29, %31 : vector<16x128xf32>
    %c0_26 = arith.constant 0 : index
    %c0_27 = arith.constant 0 : index
    %33 = vector.load %arg8[%c0_26, %c0_27] : memref<16x128xf32, #tpu.memory_space<vmem>>, vector<16x128xf32>
    tpu.vector_store %arg8[%c0_26, %c0_27], %32 {strides = array<i32>} : memref<16x128xf32, #tpu.memory_space<vmem>>, vector<16x128xf32>,
    return
  }
  func.func @transform_0(%arg0: i32) -> (i32, i32) {
    %c0_i32 = arith.constant 0 : i32
    %c0_i32_0 = arith.constant 0 : i32
    return %arg0, %c0_i32 : i32, i32
  }
  func.func @transform_1(%arg0: i32) -> (i32, i32) {
    %c0_i32 = arith.constant 0 : i32
    %c0_i32_0 = arith.constant 0 : i32
    %c0_i32_1 = arith.constant 0 : i32
    return %c0_i32, %c0_i32_0 : i32, i32
  }
  func.func @transform_2(%arg0: i32) -> (i32, i32) {
    %c0_i32 = arith.constant 0 : i32
    %c0_i32_0 = arith.constant 0 : i32
    %c0_i32_1 = arith.constant 0 : i32
    return %c0_i32, %c0_i32_0 : i32, i32
  }
  func.func @transform_3(%arg0: i32) -> (i32, i32, i32) {
    %c0_i32 = arith.constant 0 : i32
    %c0_i32_0 = arith.constant 0 : i32
    %c0_i32_1 = arith.constant 0 : i32
    %c0_i32_2 = arith.constant 0 : i32
    return %c0_i32, %c0_i32_0, %c0_i32_1 : i32, i32, i32
  }
  func.func @transform_4(%arg0: i32) -> (i32, i32, i32) {
    %c0_i32 = arith.constant 0 : i32
    %c0_i32_0 = arith.constant 0 : i32
    %c0_i32_1 = arith.constant 0 : i32
    %c0_i32_2 = arith.constant 0 : i32
    return %c0_i32, %c0_i32_0, %c0_i32_1 : i32, i32, i32
  }
  func.func @transform_5(%arg0: i32) -> (i32, i32) {
    %c0_i32 = arith.constant 0 : i32
    %c0_i32_0 = arith.constant 0 : i32
    %c0_i32_1 = arith.constant 0 : i32
    return %c0_i32, %c0_i32_0 : i32, i32
  }
  func.func @transform_6(%arg0: i32) -> (i32, i32) {
    %c0_i32 = arith.constant 0 : i32
    %c0_i32_0 = arith.constant 0 : i32
    %c0_i32_1 = arith.constant 0 : i32
    return %c0_i32, %c0_i32_0 : i32, i32
  }
  func.func @transform_7(%arg0: i32) -> (i32, i32) {
    %c0_i32 = arith.constant 0 : i32
    %c0_i32_0 = arith.constant 0 : i32
    return %arg0, %c0_i32 : i32, i32
  }
}

</mosaic_0001>

<bundles_post_ra>
// kernel: tpu_custom_call.1
= control target key start
LH: loop header
LB: loop body
LE: loop exit
PB: predicated region body
PF: predicated region fallthrough
CT: control target
= control target key end

     0   :  { %12 = vsyncpa [#allocation3], 0  ;;  %s528_s0 = inlined_call_operand.hbm [shape: f32[16,128], index: 0, kind: input, shape index: {}]   ;;  %s529_s1 = inlined_call_operand.hbm [shape: f32[128,128], index: 1, kind: input, shape index: {}]   ;;  %s530_s2 = inlined_call_operand.vmem [shape: f32[1,128], index: 2, kind: input, shape index: {}]   ;;  %s531_s3 = inlined_call_operand.hbm [shape: f32[2,128,128], index: 3, kind: input, shape index: {}]   ;;  %s532_s4 = inlined_call_operand.vmem [shape: f32[2,1,128], index: 4, kind: input, shape index: {}]   ;;  %s533_s5 = inlined_call_operand.hbm [shape: f32[128,128], index: 5, kind: input, shape index: {}]   ;;  %s534_s6 = inlined_call_operand.vmem [shape: f32[1,128], index: 6, kind: input, shape index: {}]   ;;  %s535_s7 = inlined_call_operand.hbm [shape: f32[16,128], index: 7, kind: output, shape index: {}]  }
   0x1   :  { %13 = vsyncpa [#allocation6], 0 }
   0x2   :  { %14 = vsyncpa [#allocation9], 0 }
   0x3   :  { %15 = vsyncpa [#allocation4], 0  ;;  %s33_s26 = sshll.u32 %s529_s1, 4  ;;  %s439_s27 = smov [#allocation5]   ;;  %s34_s26 = int_to_ptr.hbm [resolvable:$true] %s33_s26 }
   0x4   :  { %s35_s28 = sshll.u32 %s439_s27, 4  ;;  %s20_s8 = sshll.u32 %s528_s0, 4  ;;  %s36_s28 = int_to_ptr.vmem [resolvable:$true] %s35_s28  ;;  %s21_s8 = int_to_ptr.hbm [resolvable:$true] %s20_s8 }
   0x5   :  { %s440_s9 = smov 128   ;;  %s441_s10 = smov 8  }
   0x6   :  { %41 = dma.hbm_to_vmem [thread:$0]  %s34_s26, 2048, %s36_s28, [#allocation6], %s440_s9, %s440_s9, %s441_s10  }
   0x7   :  { %s442_s11 = smov [#allocation2]   ;;  %s48_s1 = sshll.u32 %s531_s3, 4  ;;  %s49_s1 = int_to_ptr.hbm [resolvable:$true] %s48_s1 }
   0x8   :  { %s22_s12 = sshll.u32 %s442_s11, 4  ;;  %s63_s16 = sshll.u32 %s533_s5, 4  ;;  %s23_s12 = int_to_ptr.vmem [resolvable:$true] %s22_s12  ;;  %s64_s16 = int_to_ptr.hbm [resolvable:$true] %s63_s16 }
   0x9   :  { %28 = dma.hbm_to_vmem [thread:$0]  %s21_s8, 256, %s23_s12, [#allocation3], %s440_s9, %s440_s9, %s441_s10  }
   0xa   :  { %s443_s17 = smov [#allocation7]   ;;  %s444_s19 = smov [#allocation8]  }
   0xb   :  { %s50_s18 = sshll.u32 %s443_s17, 4  ;;  %s65_s3 = sshll.u32 %s444_s19, 4  ;;  %s51_s18 = int_to_ptr.vmem [resolvable:$true] %s50_s18  ;;  %s66_s3 = int_to_ptr.vmem [resolvable:$true] %s65_s3 }
   0xc   :  { %56 = dma.hbm_to_vmem [thread:$0]  %s49_s1, 4096, %s51_s18, [#allocation6], %s440_s9, %s440_s9, %s441_s10  }
   0xd   :  { %71 = dma.hbm_to_vmem [thread:$0]  %s64_s16, 2048, %s66_s3, [#allocation9], %s440_s9, %s440_s9, %s441_s10  }
   0xe   :  { %431 = dma.done.wait [#allocation3], 256  }
   0xf   :  { %432 = vsyncadd [#allocation3], 4294967040 }
  0x10   :  { %433 = dma.done.wait [#allocation6], 6144  }
  0x11   :  { %434 = vsyncadd [#allocation6], 4294961152 }
  0x12   :  { %435 = dma.done.wait [#allocation9], 2048  }
  0x13   :  { %436 = vsyncadd [#allocation9], 4294965248  ;;  %v107_v0 = vld [vmem:[#allocation5 + $0x78] sm:$0xff]  ;;  %v106_v1 = vld [vmem:[#allocation5 + $0x70] sm:$0xff]  ;;  %s445_s26 = smov [#allocation10]   ;;  %s284_s29 = sshll.u32 %s535_s7, 4  ;;  %s285_s29 = int_to_ptr.hbm [resolvable:$true] %s284_s29 }
  0x14   :  { %112 = vmatpush.msra.mxu0 %v107_v0  ;;  %v105_v2 = vld [vmem:[#allocation5 + $0x68] sm:$0xff]  ;;  %v104_v3 = vld [vmem:[#allocation5 + $0x60] sm:$0xff]  ;;  %v103_v4 = vld [vmem:[#allocation5 + $0x58] sm:$0xff]  ;;  %s282_s27 = sshll.u32 %s445_s26, 4  ;;  %s283_s27 = int_to_ptr.vmem [resolvable:$true] %s282_s27 }
  0x15   :  { %v102_v5 = vld [vmem:[#allocation5 + $0x50] sm:$0xff]  ;;  %v152_v6 = vld [vmem:[#allocation7 + $0x78] sm:$0xff]  ;;  %v101_v8 = vld [vmem:[#allocation5 + $0x48] sm:$0xff] }
  0x16   :  { %113 = vmatpush.msra.mxu0 %v106_v1  ;;  %v151_v7 = vld [vmem:[#allocation7 + $0x70] sm:$0xff]  ;;  %157 = vmatpush.msra.mxu1 %v152_v6  ;;  %v150_v9 = vld [vmem:[#allocation7 + $0x68] sm:$0xff]  ;;  %v100_v10 = vld [vmem:[#allocation5 + $0x40] sm:$0xff] }
  0x17   :  { %v149_v11 = vld [vmem:[#allocation7 + $0x60] sm:$0xff]  ;;  %v99_v12 = vld [vmem:[#allocation5 + $0x38] sm:$0xff]  ;;  %v98_v14 = vld [vmem:[#allocation5 + $0x30] sm:$0xff] }
  0x18   :  { %114 = vmatpush.msra.mxu0 %v105_v2  ;;  %158 = vmatpush.msra.mxu1 %v151_v7  ;;  %v148_v13 = vld [vmem:[#allocation7 + $0x58] sm:$0xff]  ;;  %v147_v15 = vld [vmem:[#allocation7 + $0x50] sm:$0xff]  ;;  %v97_v16 = vld [vmem:[#allocation5 + $0x28] sm:$0xff] }
  0x19   :  { %v146_v17 = vld [vmem:[#allocation7 + $0x48] sm:$0xff]  ;;  %v96_v18 = vld [vmem:[#allocation5 + $0x20] sm:$0xff]  ;;  %v95_v20 = vld [vmem:[#allocation5 + $0x18] sm:$0xff] }
  0x1a   :  { %115 = vmatpush.msra.mxu0 %v104_v3  ;;  %159 = vmatpush.msra.mxu1 %v150_v9  ;;  %v145_v19 = vld [vmem:[#allocation7 + $0x40] sm:$0xff]  ;;  %v144_v21 = vld [vmem:[#allocation7 + $0x38] sm:$0xff]  ;;  %v94_v22 = vld [vmem:[#allocation5 + $0x10] sm:$0xff] }
  0x1b   :  { %v143_v23 = vld [vmem:[#allocation7 + $0x30] sm:$0xff]  ;;  %v93_v24 = vld [vmem:[#allocation5 + $0x8] sm:$0xff]  ;;  %v92_v26 = vld [vmem:[#allocation5] sm:$0xff] }
  0x1c   :  { %116 = vmatpush.msra.mxu0 %v103_v4  ;;  %160 = vmatpush.msra.mxu1 %v149_v11  ;;  %v142_v25 = vld [vmem:[#allocation7 + $0x28] sm:$0xff]  ;;  %v141_v27 = vld [vmem:[#allocation7 + $0x20] sm:$0xff]  ;;  %v90_v28 = vld [vmem:[#allocation2] sm:$0xff] }
  0x1d   :  { %v140_v29 = vld [vmem:[#allocation7 + $0x18] sm:$0xff]  ;;  %v139_v31 = vld [vmem:[#allocation7 + $0x10] sm:$0xff]  ;;  %v138_v32 = vld [vmem:[#allocation7 + $0x8] sm:$0xff] }
  0x1e   :  { %117 = vmatpush.msra.mxu0 %v102_v5  ;;  %161 = vmatpush.msra.mxu1 %v148_v13  ;;  %v91_v30 = vld [vmem:[#allocation2 + $0x8] sm:$0xff]  ;;  %v137_v33 = vld [vmem:[#allocation7] sm:$0xff]  ;;  %v199_v35 = vld [vmem:[#allocation7 + $0xf0] sm:$0xff] }
  0x1f   :  { %v200_v34 = vld [vmem:[#allocation7 + $0xf8] sm:$0xff]  ;;  %v198_v36 = vld [vmem:[#allocation7 + $0xe8] sm:$0xff]  ;;  %v197_v37 = vld [vmem:[#allocation7 + $0xe0] sm:$0xff] }
  0x20   :  { %118 = vmatpush.msra.mxu0 %v101_v8  ;;  %162 = vmatpush.msra.mxu1 %v147_v15  ;;  %v196_v38 = vld [vmem:[#allocation7 + $0xd8] sm:$0xff]  ;;  %v195_v39 = vld [vmem:[#allocation7 + $0xd0] sm:$0xff]  ;;  %v194_v40 = vld [vmem:[#allocation7 + $0xc8] sm:$0xff] }
  0x21   :  { %206 = vmatpush.msra.mxu2 %v200_v34  ;;  %v193_v41 = vld [vmem:[#allocation7 + $0xc0] sm:$0xff]  ;;  %v192_v42 = vld [vmem:[#allocation7 + $0xb8] sm:$0xff]  ;;  %v307_v43 = vld [vmem:[%s530_s2] ss:$0 sm:$0xff] }
  0x22   :  { %119 = vmatpush.msra.mxu0 %v100_v10  ;;  %163 = vmatpush.msra.mxu1 %v146_v17  ;;  %v191_v44 = vld [vmem:[#allocation7 + $0xb0] sm:$0xff]  ;;  %v190_v45 = vld [vmem:[#allocation7 + $0xa8] sm:$0xff]  ;;  %v189_v48 = vld [vmem:[#allocation7 + $0xa0] sm:$0xff] }
  0x23   :  { %207 = vmatpush.msra.mxu2 %v199_v35  ;;  %v188_v53 = vld [vmem:[#allocation7 + $0x98] sm:$0xff]  ;;  %v187_v54 = vld [vmem:[#allocation7 + $0x90] sm:$0xff]  ;;  %v186_v55 = vld [vmem:[#allocation7 + $0x88] sm:$0xff] }
  0x24   :  { %120 = vmatpush.msra.mxu0 %v99_v12  ;;  %164 = vmatpush.msra.mxu1 %v145_v19  ;;  %v185_v56 = vld [vmem:[#allocation7 + $0x80] sm:$0xff]  ;;  %v248_v57 = vld [vmem:[#allocation8 + $0x78] sm:$0xff]  ;;  %v247_v58 = vld [vmem:[#allocation8 + $0x70] sm:$0xff] }
  0x25   :  { %208 = vmatpush.msra.mxu2 %v198_v36  ;;  %253 = vmatpush.msra.mxu3 %v248_v57  ;;  %v246_v59 = vld [vmem:[#allocation8 + $0x68] sm:$0xff]  ;;  %v245_v60 = vld [vmem:[#allocation8 + $0x60] sm:$0xff]  ;;  %v244_v61 = vld [vmem:[#allocation8 + $0x58] sm:$0xff] }
  0x26   :  { %121 = vmatpush.msra.mxu0 %v98_v14  ;;  %165 = vmatpush.msra.mxu1 %v144_v21  ;;  %v243_v62 = vld [vmem:[#allocation8 + $0x50] sm:$0xff]  ;;  %v242_v63 = vld [vmem:[#allocation8 + $0x48] sm:$0xff]  ;;  %v241_v0 = vld [vmem:[#allocation8 + $0x40] sm:$0xff] }
  0x27   :  { %209 = vmatpush.msra.mxu2 %v197_v37  ;;  %254 = vmatpush.msra.mxu3 %v247_v58  ;;  %v308_v1 = vld [vmem:[%s532_s4] ss:$0 sm:$0xff]  ;;  %v240_v2 = vld [vmem:[#allocation8 + $0x38] sm:$0xff]  ;;  %v238_v6 = vld [vmem:[#allocation8 + $0x28] sm:$0xff] }
  0x28   :  { %122 = vmatpush.msra.mxu0 %v97_v16  ;;  %166 = vmatpush.msra.mxu1 %v143_v23  ;;  %v239_v3 = vld [vmem:[#allocation8 + $0x30] sm:$0xff]  ;;  %v237_v8 = vld [vmem:[#allocation8 + $0x20] sm:$0xff]  ;;  %v236_v14 = vld [vmem:[#allocation8 + $0x18] sm:$0xff] }
  0x29   :  { %210 = vmatpush.msra.mxu2 %v196_v38  ;;  %255 = vmatpush.msra.mxu3 %v246_v59  ;;  %v235_v15 = vld [vmem:[#allocation8 + $0x10] sm:$0xff]  ;;  %v234_v16 = vld [vmem:[#allocation8 + $0x8] sm:$0xff]  ;;  %v233_v17 = vld [vmem:[#allocation8] sm:$0xff] }
  0x2a   :  { %123 = vmatpush.msra.mxu0 %v96_v18  ;;  %167 = vmatpush.msra.mxu1 %v142_v25  ;;  %v309_v18 = vld [vmem:[%s532_s4 + $0x1] ss:$0 sm:$0xff] }
  0x2b   :  { %211 = vmatpush.msra.mxu2 %v195_v39  ;;  %256 = vmatpush.msra.mxu3 %v245_v60 }
  0x2c   :  { %124 = vmatpush.msra.mxu0 %v95_v20  ;;  %168 = vmatpush.msra.mxu1 %v141_v27  ;;  %v310_v27 = vld [vmem:[%s534_s6] ss:$0 sm:$0xff] }
  0x2d   :  { %212 = vmatpush.msra.mxu2 %v194_v40  ;;  %257 = vmatpush.msra.mxu3 %v244_v61 }
  0x2e   :  { %125 = vmatpush.msra.mxu0 %v94_v22  ;;  %169 = vmatpush.msra.mxu1 %v140_v29 }
  0x2f   :  { %213 = vmatpush.msra.mxu2 %v193_v41  ;;  %258 = vmatpush.msra.mxu3 %v243_v62 }
  0x30   :  { %126 = vmatpush.msra.mxu0 %v93_v24  ;;  %170 = vmatpush.msra.mxu1 %v139_v31 }
  0x31   :  { %214 = vmatpush.msra.mxu2 %v192_v42  ;;  %259 = vmatpush.msra.mxu3 %v242_v63 }
  0x32   :  { %127 = vmatpush.msra.mxu0 %v92_v26  ;;  %171 = vmatpush.msra.mxu1 %v138_v32 }
  0x33   :  { %128 = vmatmul.f32.vlgmr.msra.gmra.mxu0 %v90_v28  ;;  %215 = vmatpush.msra.mxu2 %v191_v44 }
  0x34   :  { %172 = vmatpush.msra.mxu1 %v137_v33  ;;  %260 = vmatpush.msra.mxu3 %v241_v0 }
  0x35   :  { %216 = vmatpush.msra.mxu2 %v190_v45 }
  0x36   :  { %261 = vmatpush.msra.mxu3 %v240_v2 }
  0x37   :  { %217 = vmatpush.msra.mxu2 %v189_v48 }
  0x38   :  { %262 = vmatpush.msra.mxu3 %v239_v3 }
  0x39   :  { %218 = vmatpush.msra.mxu2 %v188_v53 }
  0x3a   :  { %263 = vmatpush.msra.mxu3 %v238_v6 }
  0x3b   :  { %131 = vmatmul.f32.gmra.mxu0 %v91_v30  ;;  %219 = vmatpush.msra.mxu2 %v187_v54 }
  0x3c   :  { %264 = vmatpush.msra.mxu3 %v237_v8 }
  0x3d   :  { %220 = vmatpush.msra.mxu2 %v186_v55 }
  0x3e   :  { %265 = vmatpush.msra.mxu3 %v236_v14 }
  0x3f   :  { %221 = vmatpush.msra.mxu2 %v185_v56 }
  0x40   :  { %266 = vmatpush.msra.mxu3 %v235_v15 }
  0x42   :  { %267 = vmatpush.msra.mxu3 %v234_v16 }
  0x44   :  { %268 = vmatpush.msra.mxu3 %v233_v17 }
  0xb0   :  { %v129_v46 = vpop.f32.mrf.mxu0 }
  0xb1   :  { %v130_v47 = vadd.f32 %v307_v43, %v129_v46 }
  0xb3   :  { %v135_v49 = vmax.f32 %v130_v47, 0.0 }
  0xb5   :  { %173 = vmatmul.f32.vlgmr.msra.gmra.mxu1 %v135_v49 }
  0xb8   :  { %v132_v50 = vpop.f32.mrf.mxu0 }
  0xb9   :  { %v133_v51 = vadd.f32 %v307_v43, %v132_v50 }
  0xbb   :  { %v136_v52 = vmax.f32 %v133_v51, 0.0 }
  0xbd   :  { %176 = vmatmul.f32.gmra.mxu1 %v136_v52 }
 0x132   :  { %v174_v4 = vpop.f32.mrf.mxu1 }
 0x133   :  { %v175_v5 = vadd.f32 %v308_v1, %v174_v4 }
 0x135   :  { %v180_v7 = vmax.f32 %v175_v5, 0.0 }
 0x137   :  { %v182_v9 = vadd.f32 %v180_v7, %v135_v49 }
 0x139   :  { %222 = vmatmul.f32.vlgmr.msra.gmra.mxu2 %v182_v9 }
 0x13a   :  { %v177_v10 = vpop.f32.mrf.mxu1 }
 0x13b   :  { %v178_v11 = vadd.f32 %v308_v1, %v177_v10 }
 0x13d   :  { %v181_v12 = vmax.f32 %v178_v11, 0.0 }
 0x13f   :  { %v183_v13 = vadd.f32 %v181_v12, %v136_v52 }
 0x141   :  { %225 = vmatmul.f32.gmra.mxu2 %v183_v13 }
 0x1bc   :  { %v223_v19 = vpop.f32.mrf.mxu2 }
 0x1bd   :  { %v224_v20 = vadd.f32 %v309_v18, %v223_v19 }
 0x1bf   :  { %v229_v21 = vmax.f32 %v224_v20, 0.0 }
 0x1c1   :  { %v231_v22 = vadd.f32 %v229_v21, %v182_v9 }
 0x1c3   :  { %269 = vmatmul.f32.vlgmr.msra.gmra.mxu3 %v231_v22 }
 0x1c4   :  { %v226_v23 = vpop.f32.mrf.mxu2 }
 0x1c5   :  { %v227_v24 = vadd.f32 %v309_v18, %v226_v23 }
 0x1c7   :  { %v230_v25 = vmax.f32 %v227_v24, 0.0 }
 0x1c9   :  { %v232_v26 = vadd.f32 %v230_v25, %v183_v13 }
 0x1cb   :  { %272 = vmatmul.f32.gmra.mxu3 %v232_v26 }
 0x246   :  { %v270_v28 = vpop.f32.mrf.mxu3 }
 0x247   :  { %v271_v29 = vadd.f32 %v310_v27, %v270_v28 }
 0x249   :  { %276 = vst [vmem:[#allocation10] sm:$0xff] %v271_v29 }
 0x24e   :  { %v273_v30 = vpop.f32.mrf.mxu3 }
 0x24f   :  { %v274_v31 = vadd.f32 %v310_v27, %v273_v30 }
 0x251   :  { %277 = vst [vmem:[#allocation10 + $0x8] sm:$0xff] %v274_v31 }
 0x252   :  { %290 = dma.vmem_to_hbm [thread:$0]  %s283_s27, 256, %s285_s29, [#allocation4], %s440_s9, %s440_s9, %s441_s10  }
 0x253   :  { %437 = dma.done.wait [#allocation4], 256  }
 0x254   :  { %438 = vsyncadd [#allocation4], 4294967040 }
 0x255   :  { %295 = vsyncpa [#allocation3], 1 }
 0x256   :  { %296 = vsyncpa [#allocation6], 1 }
 0x257   :  { %297 = vsyncpa [#allocation9], 1 }
 0x258   :  { %298 = vsyncpa [#allocation4], 1 }

</bundles_post_ra>
